<compile_context>
chip_gen: v7x
topology: tpu7x:2x2x1
jax: 0.10.0
libtpu: 0.0.40
codegen_flags: <defaults>
</compile_context>

<pallas_src>
import functools

import numpy as np
import jax
import jax.numpy as jnp
from jax.experimental import pallas as pl
from jax.experimental.pallas import tpu as pltpu


def _round_up(n, m):
    return ((n + m - 1) // m) * m


def _pick_tile_n(N, L, s_pad):
    """Rows per grid step.

    Big tiles amortize the per-step pipeline overhead and fatten DMAs, but the
    per-step footprint (double-buffered f32 input tile + packed output tile)
    must stay well inside v7x's 64 MiB VMEM, and large problems should still
    produce >= 4 grid steps so both v7x TensorCores get work on the "parallel"
    row axis.
    """
    n8 = _round_up(N, 8)
    bytes_per_row = 2 * 4 * (L + 3 * s_pad)            # dbl-buffered f32 in + packed out
    vmem_rows = max(8, ((24 << 20) // bytes_per_row) // 8 * 8)
    tile = min(2048, vmem_rows, n8)
    if n8 >= 32:
        tile = min(tile, _round_up(pl.cdiv(n8, 4), 8))  # keep >= 4 steps when possible
    return max(8, (tile // 8) * 8)


def _build_spp_weights(L, size, s_pad):
    """Host-side (static) precompute of the fused adaptive-pool weight matrix.

    Column layout (each segment s_pad lanes wide, lane-dense):
      [ avg (1/count inside each window) | one-hot window elem 0 | ... | elem kmax-1 ]
    """
    idx = np.arange(size)
    starts = (idx * L) // size                       # floor(i * L / S)
    ends = ((idx + 1) * L + size - 1) // size        # ceil((i + 1) * L / S)
    counts = ends - starts                           # window lengths >= 1
    kmax = int(counts.max())

    w = np.zeros((L, (kmax + 1) * s_pad), np.float32)
    for i in range(size):
        w[starts[i]:ends[i], i] = 1.0 / float(counts[i])
        for k in range(kmax):
            j = min(starts[i] + k, ends[i] - 1)      # clamp: repeats don't change max/min
            w[j, (k + 1) * s_pad + i] = 1.0
    return jnp.asarray(w), kmax


def _spp_kernel(x_ref, w_ref, o_ref, *, kmax, s_pad):
    # ONE wide MXU matmul per tile (full MXU output width on v6e/v7x).
    # f32 path on the Mosaic MXU is precise enough for exact one-hot selection
    # and the 1/count averaging (verified against the f32 reference at 1e-5).
    g = jnp.dot(x_ref[...], w_ref[...], preferred_element_type=jnp.float32)

    avg = g[:, 0:s_pad]                              # lane-aligned (x128) slices: free
    mx = g[:, s_pad:2 * s_pad]
    mn = mx
    for k in range(1, kmax):                         # kmax is small & static (VPU work)
        sel = g[:, (k + 1) * s_pad:(k + 2) * s_pad]
        mx = jnp.maximum(mx, sel)
        mn = jnp.minimum(mn, sel)

    # Packed lane-dense output: [max | avg | min] (mirrors torch.cat order).
    o_ref[:, 0:s_pad] = mx.astype(o_ref.dtype)
    o_ref[:, s_pad:2 * s_pad] = avg.astype(o_ref.dtype)
    o_ref[:, 2 * s_pad:3 * s_pad] = mn.astype(o_ref.dtype)


def text_spp2_forward(x, size=128):
    """Pallas equivalent of TextSPP2.forward: returns (B, C, size, 3) = [max, avg, min]."""
    B, C, L = x.shape
    N = B * C
    s_pad = _round_up(size, 128)                     # lane-dense output segment width
    tile_n = _pick_tile_n(N, L, s_pad)
    n_pad = _round_up(N, tile_n)

    xf = x.reshape(N, L).astype(jnp.float32)
    if n_pad != N:
        xf = jnp.pad(xf, ((0, n_pad - N), (0, 0)))

    w, kmax = _build_spp_weights(L, size, s_pad)
    w_cols = (kmax + 1) * s_pad

    kernel = functools.partial(_spp_kernel, kmax=kmax, s_pad=s_pad)
    cost = pl.CostEstimate(
        flops=2 * n_pad * L * w_cols,
        transcendentals=0,
        bytes_accessed=4 * (n_pad * L + L * w_cols + 3 * n_pad * s_pad),
    )

    packed = pl.pallas_call(
        kernel,
        out_shape=jax.ShapeDtypeStruct((n_pad, 3 * s_pad), jnp.float32),
        grid=(n_pad // tile_n,),
        in_specs=[
            pl.BlockSpec((tile_n, L), lambda i: (i, 0)),   # activations: streamed
            pl.BlockSpec((L, w_cols), lambda i: (0, 0)),   # fused weights: resident
        ],
        out_specs=pl.BlockSpec((tile_n, 3 * s_pad), lambda i: (i, 0)),
        compiler_params=pltpu.CompilerParams(
            dimension_semantics=("parallel",),             # v7x: rows split across 2 TCs
        ),
        cost_estimate=cost,
    )(xf, w)

    # Single fused transpose to present PyTorch's (B, C, size, 3) layout.
    out = packed[:N].reshape(N, 3, s_pad)[:, :, :size]     # (N, 3, size)
    return jnp.transpose(out, (0, 2, 1)).reshape(B, C, size, 3)


def _reference_text_spp2(x, size):
    """Pure-numpy reference of PyTorch adaptive max/avg/min pooling."""
    xn = np.asarray(x)
    B, C, L = xn.shape
    idx = np.arange(size)
    starts = (idx * L) // size
    ends = ((idx + 1) * L + size - 1) // size
    out = np.zeros((B, C, size, 3), np.float32)
    for i in range(size):
        w = xn[:, :, starts[i]:ends[i]]
        out[:, :, i, 0] = w.max(axis=-1)      # AdaptiveMaxPool1d
        out[:, :, i, 1] = w.mean(axis=-1)     # AdaptiveAvgPool1d
        out[:, :, i, 2] = w.min(axis=-1)      # -AdaptiveMaxPool1d(-x)
    return out


if __name__ == "__main__":
    key = jax.random.PRNGKey(0)
    B, C, L, SIZE = 2, 4, 200, 128

    x = jax.random.normal(key, (B, C, L), jnp.float32)

    y = text_spp2_forward(x, size=SIZE)
    jax.block_until_ready(y)

    ref = _reference_text_spp2(x, SIZE)
    assert y.shape == (B, C, SIZE, 3), y.shape
    assert np.allclose(np.asarray(y), ref, atol=1e-5, rtol=1e-5)

    print("KERNEL_OK")
</pallas_src>

<mosaic_0001>
module attributes {stable_mosaic.version = 11 : i64} {
  func.func @_spp_kernel(%arg0: i32, %arg1: memref<8x200xf32, #tpu.memory_space<vmem>>, %arg2: memref<200x512xf32, #tpu.memory_space<vmem>>, %arg3: memref<8x384xf32, #tpu.memory_space<vmem>>) attributes {dimension_semantics = [#tpu.dimension_semantics<parallel>], iteration_bounds = array<i64: 1>, scalar_prefetch = 0 : i64, scratch_operands = 0 : i64, tpu.core_type = #tpu.core_type<tc>, window_params = [{transform_indices = @transform_0, window_bounds = array<i64: 8, 200>}, {pipeline_mode = #tpu.pipeline_mode<synchronous>, transform_indices = @transform_1, window_bounds = array<i64: 200, 512>}, {transform_indices = @transform_2, window_bounds = array<i64: 8, 384>}]} {
    %c0 = arith.constant 0 : index
    %c0_0 = arith.constant 0 : index
    %0 = vector.load %arg1[%c0, %c0_0] : memref<8x200xf32, #tpu.memory_space<vmem>>, vector<8x200xf32>
    %c0_1 = arith.constant 0 : index
    %c0_2 = arith.constant 0 : index
    %1 = vector.load %arg2[%c0_1, %c0_2] : memref<200x512xf32, #tpu.memory_space<vmem>>, vector<200x512xf32>
    %cst = arith.constant dense<0.000000e+00> : vector<8x512xf32>
    %2 = tpu.matmul %0, %1, %cst {dimension_numbers = #tpu.dot_dimension_numbers<[1], [0], [0], [1], [0, 0, 1, 1], [], []>} : vector<8x200xf32>, vector<200x512xf32>, vector<8x512xf32> -> vector<8x512xf32>
    %3 = vector.extract_strided_slice %2 {offsets = [0, 0], sizes = [8, 128], strides = [1, 1]} : vector<8x512xf32> to vector<8x128xf32>
    %4 = vector.extract_strided_slice %2 {offsets = [0, 128], sizes = [8, 128], strides = [1, 1]} : vector<8x512xf32> to vector<8x128xf32>
    %5 = vector.extract_strided_slice %2 {offsets = [0, 256], sizes = [8, 128], strides = [1, 1]} : vector<8x512xf32> to vector<8x128xf32>
    %6 = arith.maximumf %4, %5 : vector<8x128xf32>
    %7 = arith.minimumf %4, %5 : vector<8x128xf32>
    %8 = vector.extract_strided_slice %2 {offsets = [0, 384], sizes = [8, 128], strides = [1, 1]} : vector<8x512xf32> to vector<8x128xf32>
    %9 = arith.maximumf %6, %8 : vector<8x128xf32>
    %10 = arith.minimumf %7, %8 : vector<8x128xf32>
    %c0_3 = arith.constant 0 : index
    %c0_4 = arith.constant 0 : index
    %11 = vector.load %arg3[%c0_3, %c0_4] : memref<8x384xf32, #tpu.memory_space<vmem>>, vector<8x128xf32>
    tpu.vector_store %arg3[%c0_3, %c0_4], %9 {strides = array<i32>} : memref<8x384xf32, #tpu.memory_space<vmem>>, vector<8x128xf32>,
    %c0_5 = arith.constant 0 : index
    %c128 = arith.constant 128 : index
    %12 = vector.load %arg3[%c0_5, %c128] : memref<8x384xf32, #tpu.memory_space<vmem>>, vector<8x128xf32>
    tpu.vector_store %arg3[%c0_5, %c128], %3 {strides = array<i32>} : memref<8x384xf32, #tpu.memory_space<vmem>>, vector<8x128xf32>,
    %c0_6 = arith.constant 0 : index
    %c256 = arith.constant 256 : index
    %13 = vector.load %arg3[%c0_6, %c256] : memref<8x384xf32, #tpu.memory_space<vmem>>, vector<8x128xf32>
    tpu.vector_store %arg3[%c0_6, %c256], %10 {strides = array<i32>} : memref<8x384xf32, #tpu.memory_space<vmem>>, vector<8x128xf32>,
    return
  }
  func.func @transform_0(%arg0: i32) -> (i32, i32) {
    %c0_i32 = arith.constant 0 : i32
    %c0_i32_0 = arith.constant 0 : i32
    return %arg0, %c0_i32 : i32, i32
  }
  func.func @transform_1(%arg0: i32) -> (i32, i32) {
    %c0_i32 = arith.constant 0 : i32
    %c0_i32_0 = arith.constant 0 : i32
    %c0_i32_1 = arith.constant 0 : i32
    return %c0_i32, %c0_i32_0 : i32, i32
  }
  func.func @transform_2(%arg0: i32) -> (i32, i32) {
    %c0_i32 = arith.constant 0 : i32
    %c0_i32_0 = arith.constant 0 : i32
    return %arg0, %c0_i32 : i32, i32
  }
}

</mosaic_0001>

<bundles_post_ra>
// kernel: tpu_custom_call.1
= control target key start
LH: loop header
LB: loop body
LE: loop exit
PB: predicated region body
PF: predicated region fallthrough
CT: control target
= control target key end

     0   :  { %7 = vsyncpa [#allocation3], 0  ;;  %s549_s0 = inlined_call_operand.hbm [shape: f32[8,200], index: 0, kind: input, shape index: {}]   ;;  %s550_s1 = inlined_call_operand.hbm [shape: f32[200,512], index: 1, kind: input, shape index: {}]   ;;  %s551_s2 = inlined_call_operand.hbm [shape: f32[8,384], index: 2, kind: output, shape index: {}]  }
   0x1   :  { %8 = vsyncpa [#allocation6], 0 }
   0x2   :  { %9 = vsyncpa [#allocation4], 0  ;;  %s484_s9 = smov [#allocation2]   ;;  %s485_s11 = smov [#allocation5]  }
   0x3   :  { %s16_s10 = sshll.u32 %s484_s9, 4  ;;  %s25_s12 = sshll.u32 %s485_s11, 4  ;;  %s17_s10 = int_to_ptr.vmem [resolvable:$true] %s16_s10  ;;  %s504_s12 = int_to_ptr.vmem [resolvable:$true] %s25_s12 }
   0x4   :  { %s412_s15 = scalar_lea.hbm %s549_s0, 256 }
   0x5   :  { %p413_p0 = scmp.ne.s32.totalorder %s549_s0, %s412_s15  ;;  %p416_p1 = scmp.lt.u32.totalorder %s412_s15, %s549_s0 }
   0x7   :  { %p418_p2 = pnand %p416_p1, %p413_p0 }
   0x9   :  { %421 = shalt.err (!%p418_p2)
}
   0xa   :  { %s422_s20 = scalar_lea.vmem %s17_s10, 256  ;;  %p427_p4 = scmp.lt.s32.totalorder %s17_s10, %s17_s10 }
   0xb   :  { %p423_p3 = scmp.ne.s32.totalorder %s17_s10, %s422_s20  ;;  %p428_p5 = scmp.lt.s32.totalorder %s422_s20, %s422_s20 }
   0xd   :  { %p429_p6 = por %p428_p5, %p427_p4 }
   0xf   :  { %p430_p7 = pnand %p429_p6, %p423_p3 }
  0x11   :  { %433 = shalt.err (!%p430_p7)
}
  0x12   :  { %19 = dma.hbm_to_vmem [thread:$0]  %s549_s0, 256, %s17_s10, [#allocation3]  }
  0x13   :  { %s434_s25 = scalar_lea.hbm %s550_s1, 12800 }
  0x14   :  { %p435_p8 = scmp.ne.s32.totalorder %s550_s1, %s434_s25  ;;  %p438_p9 = scmp.lt.u32.totalorder %s434_s25, %s550_s1 }
  0x16   :  { %p440_p10 = pnand %p438_p9, %p435_p8 }
  0x18   :  { %443 = shalt.err (!%p440_p10)
}
  0x19   :  { %s444_s30 = scalar_lea.vmem %s504_s12, 12800  ;;  %p449_p12 = scmp.lt.s32.totalorder %s504_s12, %s504_s12 }
  0x1a   :  { %p445_p11 = scmp.ne.s32.totalorder %s504_s12, %s444_s30  ;;  %p450_p13 = scmp.lt.s32.totalorder %s444_s30, %s444_s30 }
  0x1c   :  { %p451_p0 = por %p450_p13, %p449_p12 }
  0x1e   :  { %p452_p1 = pnand %p451_p0, %p445_p11 }
  0x20   :  { %455 = shalt.err (!%p452_p1)
}
  0x21   :  { %s486_s0 = smov 512   ;;  %s487_s3 = smov 32  }
  0x22   :  { %31 = dma.hbm_to_vmem [thread:$0]  %s550_s1, 12800, %s504_s12, [#allocation6], %s486_s0, %s486_s0, %s487_s3  }
  0x23   :  { %478 = dma.done.wait [#allocation3], 256  }
  0x24   :  { %479 = vsyncadd [#allocation3], 4294967040 }
  0x25   :  { %480 = dma.done.wait [#allocation6], 12800  }
  0x26   :  { %481 = vsyncadd [#allocation6], 4294954496  ;;  %v41_v0 = vld [vmem:[#allocation5 + $0x8] sm:$0xff]  ;;  %v43_v2 = vld [vmem:[#allocation5 + $0x18] sm:$0xff]  ;;  %vm140_vm0 = vcmask 588800   ;;  %s488_s1 = smov [#allocation7]  }
  0x27   :  { %v45_v1 = vld [vmem:[#allocation5 + $0x28] sm:$0xff]  ;;  %v47_v4 = vld [vmem:[#allocation5 + $0x38] sm:$0xff]  ;;  %v40_v5 = vld [vmem:[#allocation5] sm:$0xff]  ;;  %s299_s6 = sshll.u32 %s488_s1, 4  ;;  %s300_s6 = int_to_ptr.vmem [resolvable:$true] %s299_s6 }
  0x28   :  { %v311_v3 = vpack.c.bf16 %v45_v1, %v41_v0  ;;  %v44_v6 = vld [vmem:[#allocation5 + $0x20] sm:$0xff]  ;;  %v359_v7 = vpack.c.bf16 %v47_v4, %v43_v2  ;;  %v42_v9 = vld [vmem:[#allocation5 + $0x10] sm:$0xff]  ;;  %v49_v11 = vld [vmem:[#allocation5 + $0x48] sm:$0xff]  ;;  %s456_s7 = scalar_lea.vmem %s300_s6, 384  ;;  %p461_p3 = scmp.lt.s32.totalorder %s300_s6, %s300_s6 }
  0x29   :  { %v313_v8 = vpack.c.bf16 %v44_v6, %v40_v5  ;;  %v46_v10 = vld [vmem:[#allocation5 + $0x30] sm:$0xff]  ;;  %v53_v13 = vld [vmem:[#allocation5 + $0x68] sm:$0xff]  ;;  %v51_v14 = vld [vmem:[#allocation5 + $0x58] sm:$0xff]  ;;  %p457_p2 = scmp.ne.s32.totalorder %s300_s6, %s456_s7  ;;  %p462_p4 = scmp.lt.s32.totalorder %s456_s7, %s456_s7 }
  0x2a   :  { %312 = vmatprep.subr.bf16.mxu0 %v311_v3  ;;  %v361_v12 = vpack.c.bf16 %v46_v10, %v42_v9  ;;  %v55_v15 = vld [vmem:[#allocation5 + $0x78] sm:$0xff]  ;;  %360 = vmatprep.subr.bf16.mxu1 %v359_v7  ;;  %v315_v16 = vpack.c.bf16 %v53_v13, %v49_v11  ;;  %v48_v18 = vld [vmem:[#allocation5 + $0x40] sm:$0xff]  ;;  %v50_v20 = vld [vmem:[#allocation5 + $0x50] sm:$0xff] }
  0x2b   :  { %314 = vmatpush1.bf16.msra.mxu0 %v313_v8  ;;  %v363_v17 = vpack.c.bf16 %v55_v15, %v51_v14  ;;  %v52_v19 = vld [vmem:[#allocation5 + $0x60] sm:$0xff]  ;;  %v54_v22 = vld [vmem:[#allocation5 + $0x70] sm:$0xff]  ;;  %v57_v23 = vld [vmem:[#allocation5 + $0x88] sm:$0xff]  ;;  %p463_p5 = por %p462_p4, %p461_p3 }
  0x2c   :  { %362 = vmatpush1.bf16.msra.mxu1 %v361_v12  ;;  %v317_v21 = vpack.c.bf16 %v52_v19, %v48_v18  ;;  %v61_v24 = vld [vmem:[#allocation5 + $0xa8] sm:$0xff]  ;;  %316 = vmatprep.subr.bf16.mxu0 %v315_v16  ;;  %v365_v25 = vpack.c.bf16 %v54_v22, %v50_v20  ;;  %v59_v27 = vld [vmem:[#allocation5 + $0x98] sm:$0xff]  ;;  %v56_v29 = vld [vmem:[#allocation5 + $0x80] sm:$0xff] }
  0x2d   :  { %364 = vmatprep.subr.bf16.mxu1 %v363_v17  ;;  %v319_v26 = vpack.c.bf16 %v61_v24, %v57_v23  ;;  %v63_v28 = vld [vmem:[#allocation5 + $0xb8] sm:$0xff]  ;;  %v60_v31 = vld [vmem:[#allocation5 + $0xa0] sm:$0xff]  ;;  %v58_v32 = vld [vmem:[#allocation5 + $0x90] sm:$0xff]  ;;  %p464_p6 = pnand %p463_p5, %p457_p2 }
  0x2e   :  { %v367_v30 = vpack.c.bf16 %v63_v28, %v59_v27  ;;  %v62_v33 = vld [vmem:[#allocation5 + $0xb0] sm:$0xff]  ;;  %v321_v34 = vpack.c.bf16 %v60_v31, %v56_v29  ;;  %v65_v35 = vld [vmem:[#allocation5 + $0xc8] sm:$0xff]  ;;  %v67_v37 = vld [vmem:[#allocation5 + $0xd8] sm:$0xff] }
  0x2f   :  { %318 = vmatpush1.bf16.msra.mxu0 %v317_v21  ;;  %v69_v36 = vld [vmem:[#allocation5 + $0xe8] sm:$0xff]  ;;  %v369_v38 = vpack.c.bf16 %v62_v33, %v58_v32  ;;  %v71_v40 = vld [vmem:[#allocation5 + $0xf8] sm:$0xff]  ;;  %v64_v41 = vld [vmem:[#allocation5 + $0xc0] sm:$0xff] }
  0x30   :  { %366 = vmatpush1.bf16.msra.mxu1 %v365_v25  ;;  %320 = vmatprep.subr.bf16.mxu0 %v319_v26  ;;  %v323_v39 = vpack.c.bf16 %v69_v36, %v65_v35  ;;  %v68_v42 = vld [vmem:[#allocation5 + $0xe0] sm:$0xff]  ;;  %v371_v43 = vpack.c.bf16 %v71_v40, %v67_v37  ;;  %v66_v44 = vld [vmem:[#allocation5 + $0xd0] sm:$0xff]  ;;  %v73_v46 = vld [vmem:[#allocation5 + $0x108] sm:$0xff] }
  0x31   :  { %368 = vmatprep.subr.bf16.mxu1 %v367_v30  ;;  %v70_v45 = vld [vmem:[#allocation5 + $0xf0] sm:$0xff]  ;;  %v77_v47 = vld [vmem:[#allocation5 + $0x128] sm:$0xff]  ;;  %v75_v48 = vld [vmem:[#allocation5 + $0x118] sm:$0xff]  ;;  %v325_v50 = vpack.c.bf16 %v68_v42, %v64_v41 }
  0x32   :  { %v79_v49 = vld [vmem:[#allocation5 + $0x138] sm:$0xff]  ;;  %v373_v51 = vpack.c.bf16 %v70_v45, %v66_v44  ;;  %v327_v52 = vpack.c.bf16 %v77_v47, %v73_v46  ;;  %v72_v53 = vld [vmem:[#allocation5 + $0x100] sm:$0xff]  ;;  %v74_v55 = vld [vmem:[#allocation5 + $0x110] sm:$0xff] }
  0x33   :  { %322 = vmatpush1.bf16.msra.mxu0 %v321_v34  ;;  %v76_v54 = vld [vmem:[#allocation5 + $0x120] sm:$0xff]  ;;  %v375_v56 = vpack.c.bf16 %v79_v49, %v75_v48  ;;  %v78_v57 = vld [vmem:[#allocation5 + $0x130] sm:$0xff]  ;;  %v81_v58 = vld [vmem:[#allocation5 + $0x148] sm:$0xff] }
  0x34   :  { %370 = vmatpush1.bf16.msra.mxu1 %v369_v38  ;;  %324 = vmatprep.subr.bf16.mxu0 %v323_v39  ;;  %v85_v59 = vld [vmem:[#allocation5 + $0x168] sm:$0xff]  ;;  %v83_v60 = vld [vmem:[#allocation5 + $0x158] sm:$0xff]  ;;  %v329_v62 = vpack.c.bf16 %v76_v54, %v72_v53  ;;  %v377_v63 = vpack.c.bf16 %v78_v57, %v74_v55  ;;  %v80_v1 = vld [vmem:[#allocation5 + $0x140] sm:$0xff] }
  0x35   :  { %372 = vmatprep.subr.bf16.mxu1 %v371_v43  ;;  %v87_v61 = vld [vmem:[#allocation5 + $0x178] sm:$0xff]  ;;  %v331_v0 = vpack.c.bf16 %v85_v59, %v81_v58  ;;  %v84_v2 = vld [vmem:[#allocation5 + $0x160] sm:$0xff]  ;;  %v82_v3 = vld [vmem:[#allocation5 + $0x150] sm:$0xff] }
  0x36   :  { %v379_v4 = vpack.c.bf16 %v87_v61, %v83_v60  ;;  %v86_v5 = vld [vmem:[#allocation5 + $0x170] sm:$0xff]  ;;  %v89_v6 = vld [vmem:[#allocation5 + $0x188] sm:$0xff]  ;;  %v91_v8 = vld [vmem:[#allocation5 + $0x198] sm:$0xff]  ;;  %v333_v10 = vpack.c.bf16 %v84_v2, %v80_v1 }
  0x37   :  { %326 = vmatpush1.bf16.msra.mxu0 %v325_v50  ;;  %v93_v7 = vld [vmem:[#allocation5 + $0x1a8] sm:$0xff]  ;;  %v95_v9 = vld [vmem:[#allocation5 + $0x1b8] sm:$0xff]  ;;  %v381_v11 = vpack.c.bf16 %v86_v5, %v82_v3  ;;  %v88_v13 = vld [vmem:[#allocation5 + $0x180] sm:$0xff] }
  0x38   :  { %374 = vmatpush1.bf16.msra.mxu1 %v373_v51  ;;  %328 = vmatprep.subr.bf16.mxu0 %v327_v52  ;;  %v335_v12 = vpack.c.bf16 %v93_v7, %v89_v6  ;;  %v92_v14 = vld [vmem:[#allocation5 + $0x1a0] sm:$0xff]  ;;  %v90_v15 = vld [vmem:[#allocation5 + $0x190] sm:$0xff]  ;;  %v383_v16 = vpack.c.bf16 %v95_v9, %v91_v8  ;;  %v97_v18 = vld [vmem:[#allocation5 + $0x1c8] sm:$0xff] }
  0x39   :  { %376 = vmatprep.subr.bf16.mxu1 %v375_v56  ;;  %v94_v17 = vld [vmem:[#allocation5 + $0x1b0] sm:$0xff]  ;;  %v101_v19 = vld [vmem:[#allocation5 + $0x1e8] sm:$0xff]  ;;  %v99_v20 = vld [vmem:[#allocation5 + $0x1d8] sm:$0xff]  ;;  %v337_v22 = vpack.c.bf16 %v92_v14, %v88_v13 }
  0x3a   :  { %v103_v21 = vld [vmem:[#allocation5 + $0x1f8] sm:$0xff]  ;;  %v385_v23 = vpack.c.bf16 %v94_v17, %v90_v15  ;;  %v339_v24 = vpack.c.bf16 %v101_v19, %v97_v18  ;;  %v96_v25 = vld [vmem:[#allocation5 + $0x1c0] sm:$0xff]  ;;  %v98_v27 = vld [vmem:[#allocation5 + $0x1d0] sm:$0xff] }
  0x3b   :  { %330 = vmatpush1.bf16.msra.mxu0 %v329_v62  ;;  %v100_v26 = vld [vmem:[#allocation5 + $0x1e0] sm:$0xff]  ;;  %v387_v28 = vpack.c.bf16 %v103_v21, %v99_v20  ;;  %v102_v29 = vld [vmem:[#allocation5 + $0x1f0] sm:$0xff]  ;;  %v105_v30 = vld [vmem:[#allocation5 + $0x208] sm:$0xff] }
  0x3c   :  { %378 = vmatpush1.bf16.msra.mxu1 %v377_v63  ;;  %332 = vmatprep.subr.bf16.mxu0 %v331_v0  ;;  %v109_v31 = vld [vmem:[#allocation5 + $0x228] sm:$0xff]  ;;  %v107_v32 = vld [vmem:[#allocation5 + $0x218] sm:$0xff]  ;;  %v341_v34 = vpack.c.bf16 %v100_v26, %v96_v25  ;;  %v389_v35 = vpack.c.bf16 %v102_v29, %v98_v27  ;;  %v104_v37 = vld [vmem:[#allocation5 + $0x200] sm:$0xff] }
  0x3d   :  { %380 = vmatprep.subr.bf16.mxu1 %v379_v4  ;;  %v111_v33 = vld [vmem:[#allocation5 + $0x238] sm:$0xff]  ;;  %v343_v36 = vpack.c.bf16 %v109_v31, %v105_v30  ;;  %v108_v38 = vld [vmem:[#allocation5 + $0x220] sm:$0xff]  ;;  %v106_v39 = vld [vmem:[#allocation5 + $0x210] sm:$0xff] }
  0x3e   :  { %v391_v40 = vpack.c.bf16 %v111_v33, %v107_v32  ;;  %v110_v41 = vld [vmem:[#allocation5 + $0x230] sm:$0xff]  ;;  %v113_v42 = vld [vmem:[#allocation5 + $0x248] sm:$0xff]  ;;  %v115_v44 = vld [vmem:[#allocation5 + $0x258] sm:$0xff]  ;;  %v345_v46 = vpack.c.bf16 %v108_v38, %v104_v37 }
  0x3f   :  { %334 = vmatpush1.bf16.msra.mxu0 %v333_v10  ;;  %v117_v43 = vld [vmem:[#allocation5 + $0x268] sm:$0xff]  ;;  %v119_v45 = vld [vmem:[#allocation5 + $0x278] sm:$0xff]  ;;  %v112_v47 = vld [vmem:[#allocation5 + $0x240] sm:$0xff]  ;;  %v393_v48 = vpack.c.bf16 %v110_v41, %v106_v39 }
  0x40   :  { %382 = vmatpush1.bf16.msra.mxu1 %v381_v11  ;;  %336 = vmatprep.subr.bf16.mxu0 %v335_v12  ;;  %v347_v49 = vpack.c.bf16 %v117_v43, %v113_v42  ;;  %v116_v50 = vld [vmem:[#allocation5 + $0x260] sm:$0xff]  ;;  %v114_v51 = vld [vmem:[#allocation5 + $0x250] sm:$0xff]  ;;  %v39_v52 = vld [vmem:[#allocation2 + $0x8] sm:$0xff]  ;;  %v395_v53 = vpack.c.bf16 %v119_v45, %v115_v44 }
  0x41   :  { %384 = vmatprep.subr.bf16.mxu1 %v383_v16  ;;  %v118_v54 = vld [vmem:[#allocation5 + $0x270] sm:$0xff]  ;;  %v121_v55 = vld [vmem:[#allocation5 + $0x288] sm:$0xff]  ;;  %309 = vmatprep.mubr.msk.f32.mxu0 %vm140_vm0, %v39_v52  ;;  %v123_v57 = vld [vmem:[#allocation5 + $0x298] sm:$0xff]  ;;  %v349_v59 = vpack.c.bf16 %v116_v50, %v112_v47 }
  0x42   :  { %v125_v56 = vld [vmem:[#allocation5 + $0x2a8] sm:$0xff]  ;;  %v127_v58 = vld [vmem:[#allocation5 + $0x2b8] sm:$0xff]  ;;  %310 = vmatprep.mubr.msk.f32.mxu1 %vm140_vm0, %v39_v52  ;;  %v397_v60 = vpack.c.bf16 %v118_v54, %v114_v51  ;;  %v120_v62 = vld [vmem:[#allocation5 + $0x280] sm:$0xff] }
  0x43   :  { %338 = vmatpush1.bf16.msra.mxu0 %v337_v22  ;;  %v351_v61 = vpack.c.bf16 %v125_v56, %v121_v55  ;;  %v124_v63 = vld [vmem:[#allocation5 + $0x2a0] sm:$0xff]  ;;  %v122_v0 = vld [vmem:[#allocation5 + $0x290] sm:$0xff]  ;;  %v399_v1 = vpack.c.bf16 %v127_v58, %v123_v57  ;;  %v129_v3 = vld [vmem:[#allocation5 + $0x2c8] sm:$0xff] }
  0x44   :  { %386 = vmatpush1.bf16.msra.mxu1 %v385_v23  ;;  %340 = vmatprep.subr.bf16.mxu0 %v339_v24  ;;  %v126_v2 = vld [vmem:[#allocation5 + $0x2b0] sm:$0xff]  ;;  %v133_v4 = vld [vmem:[#allocation5 + $0x2e8] sm:$0xff]  ;;  %v131_v5 = vld [vmem:[#allocation5 + $0x2d8] sm:$0xff]  ;;  %v353_v7 = vpack.c.bf16 %v124_v63, %v120_v62 }
  0x45   :  { %388 = vmatprep.subr.bf16.mxu1 %v387_v28  ;;  %v135_v6 = vld [vmem:[#allocation5 + $0x2f8] sm:$0xff]  ;;  %v401_v8 = vpack.c.bf16 %v126_v2, %v122_v0  ;;  %v355_v9 = vpack.c.bf16 %v133_v4, %v129_v3  ;;  %v128_v10 = vld [vmem:[#allocation5 + $0x2c0] sm:$0xff]  ;;  %v130_v13 = vld [vmem:[#allocation5 + $0x2d0] sm:$0xff] }
  0x46   :  { %v132_v11 = vld [vmem:[#allocation5 + $0x2e0] sm:$0xff]  ;;  %v403_v12 = vpack.c.bf16 %v135_v6, %v131_v5  ;;  %v134_v14 = vld [vmem:[#allocation5 + $0x2f0] sm:$0xff]  ;;  %v137_v17 = vld [vmem:[#allocation5 + $0x308] sm:$0xff] }
  0x47   :  { %342 = vmatpush1.bf16.msra.mxu0 %v341_v34  ;;  %v357_v15 = vpack.c.bf16 %v132_v11, %v128_v10  ;;  %v405_v16 = vpack.c.bf16 %v134_v14, %v130_v13  ;;  %v139_v18 = vld [vmem:[#allocation5 + $0x318] sm:$0xff]  ;;  %v136_v19 = vld [vmem:[#allocation5 + $0x300] sm:$0xff]  ;;  %v138_v20 = vld [vmem:[#allocation5 + $0x310] sm:$0xff] }
  0x48   :  { %390 = vmatpush1.bf16.msra.mxu1 %v389_v35  ;;  %344 = vmatprep.subr.bf16.mxu0 %v343_v36  ;;  %v38_v21 = vld [vmem:[#allocation2] sm:$0xff] }
  0x49   :  { %392 = vmatprep.subr.bf16.mxu1 %v391_v40 }
  0x4b   :  { %346 = vmatpush1.bf16.msra.mxu0 %v345_v46 }
  0x4c   :  { %394 = vmatpush1.bf16.msra.mxu1 %v393_v48  ;;  %348 = vmatprep.subr.bf16.mxu0 %v347_v49 }
  0x4d   :  { %396 = vmatprep.subr.bf16.mxu1 %v395_v53 }
  0x4f   :  { %350 = vmatpush1.bf16.msra.mxu0 %v349_v59 }
  0x50   :  { %398 = vmatpush1.bf16.msra.mxu1 %v397_v60  ;;  %352 = vmatprep.subr.bf16.mxu0 %v351_v61 }
  0x51   :  { %400 = vmatprep.subr.bf16.mxu1 %v399_v1 }
  0x53   :  { %354 = vmatpush1.bf16.msra.mxu0 %v353_v7 }
  0x54   :  { %402 = vmatpush1.bf16.msra.mxu1 %v401_v8  ;;  %356 = vmatprep.subr.bf16.mxu0 %v355_v9 }
  0x55   :  { %404 = vmatprep.subr.bf16.mxu1 %v403_v12 }
  0x57   :  { %358 = vmatpush1.bf16.msra.mxu0 %v357_v15 }
  0x58   :  { %406 = vmatpush1.bf16.msra.mxu1 %v405_v16  ;;  %192 = vmatprep.subr.mxu0 %v137_v17 }
  0x59   :  { %263 = vmatprep.subr.mxu1 %v139_v18 }
  0x5b   :  { %193 = vmatpush1.msra.mxu0 %v136_v19 }
  0x5c   :  { %264 = vmatpush1.msra.mxu1 %v138_v20  ;;  %209 = vmatmul.mubr.f32.vlgmr.msra.gmra.mrb[0].mxu0 %v38_v21 }
  0x5d   :  { %280 = vmatmul.mubr.f32.vlgmr.msra.gmra.mrb[0].mxu1 %v38_v21 }
 0x12f   :  { %v210_v22 = vpop.f32.mrb[0].mxu0 }
 0x130   :  { %291 = vst [vmem:[#allocation7 + $0x8] sm:$0xff] %v210_v22  ;;  %v281_v23 = vpop.f32.mrb[0].mxu1  ;;  %v212_v24 = vpop.f32.mrb[1].mxu0 }
 0x131   :  { %v286_v25 = vmax.f32 %v212_v24, %v281_v23  ;;  %v287_v26 = vmin.f32 %v212_v24, %v281_v23  ;;  %v283_v27 = vpop.f32.mrb[1].mxu1 }
 0x133   :  { %v288_v28 = vmax.f32 %v286_v25, %v283_v27  ;;  %v289_v29 = vmin.f32 %v287_v26, %v283_v27 }
 0x135   :  { %290 = vst [vmem:[#allocation7] sm:$0xff] %v288_v28  ;;  %292 = vst [vmem:[#allocation7 + $0x10] sm:$0xff] %v289_v29 }
 0x136   :  { %467 = shalt.err (!%p464_p6)
}
 0x137   :  { %s468_s10 = scalar_lea.hbm %s551_s2, 384 }
 0x138   :  { %p469_p7 = scmp.ne.s32.totalorder %s551_s2, %s468_s10  ;;  %p472_p8 = scmp.lt.u32.totalorder %s468_s10, %s551_s2 }
 0x13a   :  { %p474_p9 = pnand %p472_p8, %p469_p7 }
 0x13c   :  { %477 = shalt.err (!%p474_p9)
}
 0x13d   :  { %302 = dma.vmem_to_hbm [thread:$0]  %s300_s6, 384, %s551_s2, [#allocation4]  }
 0x13e   :  { %482 = dma.done.wait [#allocation4], 384  }
 0x13f   :  { %483 = vsyncadd [#allocation4], 4294966912 }
 0x140   :  { %306 = vsyncpa [#allocation3], 1 }
 0x141   :  { %307 = vsyncpa [#allocation6], 1 }
 0x142   :  { %308 = vsyncpa [#allocation4], 1 }

</bundles_post_ra>
